<compile_context>
chip_gen: v7x
topology: tpu7x:2x2x1
jax: 0.10.0
libtpu: 0.0.40
codegen_flags: <defaults>
</compile_context>

<pallas_src>
import functools
import math

import jax
import jax.numpy as jnp
from jax import lax
from jax.experimental import pallas as pl
from jax.experimental.pallas import tpu as pltpu


def _single_buffered_spec(shape, index_map):
    """Full-array, constant-index BlockSpec; single-buffered when supported."""
    try:
        return pl.BlockSpec(shape, index_map, pipeline_mode=pl.Buffered(1))
    except (AttributeError, TypeError, ValueError):
        return pl.BlockSpec(shape, index_map)


# --------------------------- projection kernel ---------------------------

def _qkv_proj_kernel(x_ref, wq_ref, wk_ref, wv_ref, q_ref, k_ref, v_ref,
                     *, num_heads, head_dim, compute_dtype):
    """Grid = (batch, seq-tile).  Projects Q (pre-scaled, head-major), K, V."""
    H, dh = num_heads, head_dim
    xb = x_ref[0]                                                  # (ts, D)
    # One (ts, D) x (D, H*dh) MXU op for all heads (1/sqrt(dh) folded into wq).
    q = jnp.dot(xb, wq_ref[...], preferred_element_type=jnp.float32)
    # Layout plumbing only: emit Q head-major so the flash kernel's score
    # matmul is a single (H*tq, dh) x (tk, dh)^T MXU op with no per-step fold.
    for h in range(H):
        q_ref[0, h] = q[:, h * dh:(h + 1) * dh].astype(compute_dtype)
    k_ref[0] = jnp.dot(xb, wk_ref[...],
                       preferred_element_type=jnp.float32).astype(compute_dtype)
    v_ref[0] = jnp.dot(xb, wv_ref[...],
                       preferred_element_type=jnp.float32).astype(compute_dtype)


# ------------------------------ flash kernel ------------------------------

def _mqa_flash_kernel(q_ref, k_ref, v_ref, wo_ref, o_ref,
                      m_scr, l_scr, acc_scr, otmp_scr,
                      *, num_heads, head_dim, tq, tk, compute_dtype):
    """Grid = (batch, query-tile, kv-tile).  kv-tile is the reduction axis."""
    qi = pl.program_id(1)
    ki = pl.program_id(2)
    H, dh = num_heads, head_dim
    q_base = qi * tq
    kv_base = ki * tk
    # Last kv tile this query tile attends to (the diagonal tile).
    diag_ki = (q_base + tq - 1) // tk

    @pl.when(ki == 0)
    def _init():
        # NOTE: ki == 0 always has an unmasked column for every row
        # (k_pos = 0 <= q_pos), so m is finite and l > 0 at finalize.
        # Keep this invariant if the kv iteration order is ever changed.
        m_scr[...] = jnp.full_like(m_scr, -jnp.inf)
        l_scr[...] = jnp.zeros_like(l_scr)
        acc_scr[...] = jnp.zeros_like(acc_scr)

    def _update(apply_mask):
        # Q block index is constant over ki -> already resident; reshape only
        # merges major dims (free).  Pre-scaled and already in compute_dtype.
        qh = q_ref[0].reshape(H * tq, dh)
        k = k_ref[0]                                               # (tk, dh)
        v = v_ref[0]                                               # (tk, dh)
        # Contract on k's dh axis directly (NT matmul) -> no explicit k.T.
        s = lax.dot_general(qh, k, (((1,), (1,)), ((), ())),
                            preferred_element_type=jnp.float32)    # (H*tq, tk)
        if apply_mask:
            # Cheap mask: (H*tq, 1) column vs (1, tk) row, one broadcast cmp.
            row = lax.broadcasted_iota(jnp.int32, (H * tq, 1), 0)
            q_pos = q_base + (row % tq)            # rows are head-major
            k_pos = kv_base + lax.broadcasted_iota(jnp.int32, (1, tk), 1)
            s = jnp.where(q_pos >= k_pos, s, -1e30)                # f32 mask
        m_prev = m_scr[...]
        m_new = jnp.maximum(m_prev, jnp.max(s, axis=-1, keepdims=True))
        alpha = jnp.exp(m_prev - m_new)
        # exp in compute dtype (bf16 EUP on v6e/v7x); row sum / acc stay f32.
        p = jnp.exp((s - m_new).astype(compute_dtype))
        l_scr[...] = alpha * l_scr[...] + jnp.sum(
            p, axis=-1, keepdims=True, dtype=jnp.float32)
        acc_scr[...] = alpha * acc_scr[...] + jnp.dot(
            p, v, preferred_element_type=jnp.float32)
        m_scr[...] = m_new

    # Fully-below-diagonal tiles need no masking at all.
    @pl.when(kv_base + tk - 1 <= q_base)
    def _update_unmasked():
        _update(apply_mask=False)

    # Diagonal-crossing tiles get the causal mask.  Fully-above tiles are
    # skipped (and their kv index_map is clamped, so no HBM traffic either).
    @pl.when(jnp.logical_and(kv_base + tk - 1 > q_base,
                             kv_base <= q_base + tq - 1))
    def _update_masked():
        _update(apply_mask=True)

    # Finalize at the diagonal tile; remaining ki steps are pure no-ops.
    @pl.when(ki == diag_ki)
    def _finalize():
        inv_l = pl.reciprocal(l_scr[...], approx=True)             # EUP path
        o_heads = acc_scr[...] * inv_l                             # (H*tq, dh)
        # layout plumbing only: fold heads back to (tq, H*dh)
        for h in range(H):
            otmp_scr[:, h * dh:(h + 1) * dh] = o_heads[h * tq:(h + 1) * tq, :]
        out = jnp.dot(otmp_scr[...].astype(compute_dtype), wo_ref[...],
                      preferred_element_type=jnp.float32)          # (tq, D)
        o_ref[0] = out.astype(o_ref.dtype)


# -------------------------------- wrapper --------------------------------

def mqa_forward(x, wq, wk, wv, wo, *, num_heads, tq=None, tk=None, ts=None,
                compute_dtype=None, vmem_limit_bytes=None):
    """Causal MQA forward: out = softmax(Q K^T / sqrt(dh)) V @ Wo."""
    B, S, D = x.shape
    HD = wq.shape[1]
    assert HD % num_heads == 0
    H = num_heads
    dh = HD // H

    if tq is None:
        tq = min(S, 128)
    if tk is None:
        tk = min(S, 256)        # fill the 256-wide MXU N dim on v6e/v7x
    if ts is None:
        ts = min(S, 256)
    for t in (tq, tk, ts):
        assert S % t == 0 and (t % 8 == 0 or t == S)

    if compute_dtype is None:
        compute_dtype = x.dtype
    compute_dtype = jnp.dtype(compute_dtype)
    out_dtype = x.dtype
    scale = 1.0 / math.sqrt(dh)

    # Cast once in the wrapper; fold the 1/sqrt(dh) scale into wq in f32
    # before the downcast (standard flash-attn bf16 Q path).
    xc = x.astype(compute_dtype)
    wqc = (wq.astype(jnp.float32) * scale).astype(compute_dtype)
    wkc = wk.astype(compute_dtype)
    wvc = wv.astype(compute_dtype)
    woc = wo.astype(compute_dtype)

    cbytes = compute_dtype.itemsize
    obytes = jnp.dtype(out_dtype).itemsize

    if vmem_limit_bytes is None:
        # Rough budget: double-buffered streams, single-buffered weights, f32
        # scratch; 2x headroom; clamped to a range valid on v5e/v6e/v7x.
        proj_b = (2 * ts * D + D * (HD + 2 * dh)
                  + 2 * (H + 2) * ts * dh) * cbytes
        flash_b = ((2 * H * tq * dh + 4 * tk * dh + HD * D) * cbytes
                   + 2 * tq * D * obytes
                   + (H * tq * (dh + 2) + tq * HD) * 4)
        vmem_limit_bytes = int(min(max(2 * max(proj_b, flash_b), 32 * 2**20),
                                   64 * 2**20))

    def _call(weight_spec):
        # ------------------- QKV projection (once per token) -------------------
        proj = pl.pallas_call(
            functools.partial(_qkv_proj_kernel, num_heads=H, head_dim=dh,
                              compute_dtype=compute_dtype),
            out_shape=(
                jax.ShapeDtypeStruct((B, H, S, dh), compute_dtype),  # Q head-major
                jax.ShapeDtypeStruct((B, S, dh), compute_dtype),     # K
                jax.ShapeDtypeStruct((B, S, dh), compute_dtype),     # V
            ),
            grid_spec=pltpu.PrefetchScalarGridSpec(
                num_scalar_prefetch=0,
                grid=(B, S // ts),
                in_specs=[
                    pl.BlockSpec((1, ts, D), lambda b, si: (b, si, 0)),
                    weight_spec((D, HD), lambda b, si: (0, 0)),
                    weight_spec((D, dh), lambda b, si: (0, 0)),
                    weight_spec((D, dh), lambda b, si: (0, 0)),
                ],
                out_specs=(
                    pl.BlockSpec((1, H, ts, dh), lambda b, si: (b, 0, si, 0)),
                    pl.BlockSpec((1, ts, dh), lambda b, si: (b, si, 0)),
                    pl.BlockSpec((1, ts, dh), lambda b, si: (b, si, 0)),
                ),
            ),
            compiler_params=pltpu.CompilerParams(
                dimension_semantics=("parallel", "parallel"),
                vmem_limit_bytes=vmem_limit_bytes),
        )
        q4, kproj, vproj = proj(xc, wqc, wkc, wvc)

        # Clamp the kv block index to the diagonal block: skipped
        # (above-diagonal) steps revisit an already-fetched block -> no DMA.
        def kv_map(b, qi, ki):
            return (b, jnp.minimum(ki, (qi * tq + tq - 1) // tk), 0)

        # --------------------------- flash attention ---------------------------
        flash = pl.pallas_call(
            functools.partial(_mqa_flash_kernel, num_heads=H, head_dim=dh,
                              tq=tq, tk=tk, compute_dtype=compute_dtype),
            out_shape=jax.ShapeDtypeStruct((B, S, D), out_dtype),
            grid_spec=pltpu.PrefetchScalarGridSpec(
                num_scalar_prefetch=0,
                grid=(B, S // tq, S // tk),
                in_specs=[
                    pl.BlockSpec((1, H, tq, dh),
                                 lambda b, qi, ki: (b, 0, qi, 0)),
                    pl.BlockSpec((1, tk, dh), kv_map),
                    pl.BlockSpec((1, tk, dh), kv_map),
                    # TODO(synk): for very large D/HD, tile wo over a grid axis
                    # (or apply the output projection in a separate matmul
                    # kernel) instead of keeping it fully resident.
                    weight_spec((HD, D), lambda b, qi, ki: (0, 0)),
                ],
                out_specs=pl.BlockSpec((1, tq, D),
                                       lambda b, qi, ki: (b, qi, 0)),
                scratch_shapes=[
                    pltpu.VMEM((H * tq, 1), jnp.float32),    # m (row max)
                    pltpu.VMEM((H * tq, 1), jnp.float32),    # l (row sum)
                    pltpu.VMEM((H * tq, dh), jnp.float32),   # acc
                    pltpu.VMEM((tq, HD), jnp.float32),       # folded heads
                ],
            ),
            compiler_params=pltpu.CompilerParams(
                dimension_semantics=("parallel", "parallel", "arbitrary"),
                vmem_limit_bytes=vmem_limit_bytes),
        )
        return flash(q4, kproj, vproj, woc)

    try:
        return _call(_single_buffered_spec)
    except Exception:
        # Fallback for jax versions where Buffered(1) single-buffering is
        # rejected at lowering time; semantics are identical.
        return _call(pl.BlockSpec)


# ------------------------------- reference -------------------------------

def mqa_reference(x, wq, wk, wv, wo, *, num_heads):
    """Pure-JAX reference for correctness checking."""
    B, S, D = x.shape
    head_dim = wq.shape[1] // num_heads
    q = (x @ wq).reshape(B, S, num_heads, head_dim)
    k = x @ wk                                              # (B, S, dh)
    v = x @ wv                                              # (B, S, dh)
    scale = 1.0 / math.sqrt(head_dim)
    s = jnp.einsum("bqhd,bkd->bhqk", q, k) * scale
    causal = jnp.tril(jnp.ones((S, S), bool))
    s = jnp.where(causal[None, None], s, -1e30)
    p = jax.nn.softmax(s, axis=-1)
    o = jnp.einsum("bhqk,bkd->bqhd", p, v).reshape(B, S, num_heads * head_dim)
    return o @ wo


if __name__ == "__main__":
    # small shapes consistent with an MQA block (multiple q/kv tiles exercised)
    B, S, D = 2, 32, 32
    H, dh = 4, 8

    key = jax.random.PRNGKey(0)
    kx, kq, kk, kv_, ko = jax.random.split(key, 5)

    x = jax.random.normal(kx, (B, S, D), dtype=jnp.float32)
    wq = jax.random.normal(kq, (D, H * dh), dtype=jnp.float32) / math.sqrt(D)
    wk = jax.random.normal(kk, (D, dh), dtype=jnp.float32) / math.sqrt(D)
    wv = jax.random.normal(kv_, (D, dh), dtype=jnp.float32) / math.sqrt(D)
    wo = jax.random.normal(ko, (H * dh, D), dtype=jnp.float32) / math.sqrt(H * dh)

    ref = mqa_reference(x, wq, wk, wv, wo, num_heads=H)

    # f32 path; tq != tk exercises unmasked / masked / skipped kv tiles,
    # the clamped kv index_map and the diagonal finalize.
    out = mqa_forward(x, wq, wk, wv, wo, num_heads=H, tq=8, tk=16, ts=16)
    out = jax.block_until_ready(out)
    assert out.shape == (B, S, D)
    assert jnp.allclose(out, ref, atol=1e-2, rtol=1e-2), "f32 mismatch vs reference"

    # bf16 compute path (MXU/EUP peak dtype on v6e/v7x); looser check.
    out_bf16 = mqa_forward(x, wq, wk, wv, wo, num_heads=H, tq=8, tk=8,
                           compute_dtype=jnp.bfloat16)
    out_bf16 = jax.block_until_ready(out_bf16)
    max_err = jnp.max(jnp.abs(out_bf16.astype(jnp.float32) - ref))
    assert max_err < 0.25, f"bf16 mismatch vs reference (max err {max_err})"

    print("KERNEL_OK")
</pallas_src>

<mosaic_0001>
module attributes {stable_mosaic.version = 11 : i64} {
  func.func @_qkv_proj_kernel(%arg0: i32, %arg1: i32, %arg2: memref<1x16x32xf32, #tpu.memory_space<vmem>>, %arg3: memref<32x32xf32, #tpu.memory_space<vmem>>, %arg4: memref<32x8xf32, #tpu.memory_space<vmem>>, %arg5: memref<32x8xf32, #tpu.memory_space<vmem>>, %arg6: memref<1x4x16x8xf32, #tpu.memory_space<vmem>>, %arg7: memref<1x16x8xf32, #tpu.memory_space<vmem>>, %arg8: memref<1x16x8xf32, #tpu.memory_space<vmem>>) attributes {dimension_semantics = [#tpu.dimension_semantics<parallel>, #tpu.dimension_semantics<parallel>], iteration_bounds = array<i64: 2, 2>, scalar_prefetch = 0 : i64, scratch_operands = 0 : i64, tpu.core_type = #tpu.core_type<tc>, window_params = [{transform_indices = @transform_0, window_bounds = array<i64: 1, 16, 32>}, {pipeline_mode = #tpu.pipeline_mode<synchronous>, transform_indices = @transform_1, window_bounds = array<i64: 32, 32>}, {pipeline_mode = #tpu.pipeline_mode<synchronous>, transform_indices = @transform_2, window_bounds = array<i64: 32, 8>}, {pipeline_mode = #tpu.pipeline_mode<synchronous>, transform_indices = @transform_3, window_bounds = array<i64: 32, 8>}, {transform_indices = @transform_4, window_bounds = array<i64: 1, 4, 16, 8>}, {transform_indices = @transform_5, window_bounds = array<i64: 1, 16, 8>}, {transform_indices = @transform_6, window_bounds = array<i64: 1, 16, 8>}]} {
    %c0 = arith.constant 0 : index
    %c0_0 = arith.constant 0 : index
    %c0_1 = arith.constant 0 : index
    %0 = vector.load %arg2[%c0, %c0_0, %c0_1] : memref<1x16x32xf32, #tpu.memory_space<vmem>>, vector<1x16x32xf32>
    %1 = vector.shape_cast %0 : vector<1x16x32xf32> to vector<16x32xf32>
    %c0_2 = arith.constant 0 : index
    %c0_3 = arith.constant 0 : index
    %2 = vector.load %arg3[%c0_2, %c0_3] : memref<32x32xf32, #tpu.memory_space<vmem>>, vector<32x32xf32>
    %cst = arith.constant dense<0.000000e+00> : vector<16x32xf32>
    %3 = tpu.matmul %1, %2, %cst {dimension_numbers = #tpu.dot_dimension_numbers<[1], [0], [0], [1], [0, 0, 1, 1], [], []>} : vector<16x32xf32>, vector<32x32xf32>, vector<16x32xf32> -> vector<16x32xf32>
    %4 = vector.extract_strided_slice %3 {offsets = [0, 0], sizes = [16, 8], strides = [1, 1]} : vector<16x32xf32> to vector<16x8xf32>
    %c0_4 = arith.constant 0 : index
    %c0_5 = arith.constant 0 : index
    %c0_6 = arith.constant 0 : index
    %c0_7 = arith.constant 0 : index
    %5 = vector.load %arg6[%c0_4, %c0_5, %c0_6, %c0_7] : memref<1x4x16x8xf32, #tpu.memory_space<vmem>>, vector<1x1x16x8xf32>
    %6 = vector.shape_cast %5 : vector<1x1x16x8xf32> to vector<16x8xf32>
    %7 = vector.shape_cast %4 : vector<16x8xf32> to vector<1x1x16x8xf32>
    tpu.vector_store %arg6[%c0_4, %c0_5, %c0_6, %c0_7], %7 {strides = array<i32>} : memref<1x4x16x8xf32, #tpu.memory_space<vmem>>, vector<1x1x16x8xf32>,
    %8 = vector.extract_strided_slice %3 {offsets = [0, 8], sizes = [16, 8], strides = [1, 1]} : vector<16x32xf32> to vector<16x8xf32>
    %c0_8 = arith.constant 0 : index
    %c1 = arith.constant 1 : index
    %c0_9 = arith.constant 0 : index
    %c0_10 = arith.constant 0 : index
    %9 = vector.load %arg6[%c0_8, %c1, %c0_9, %c0_10] : memref<1x4x16x8xf32, #tpu.memory_space<vmem>>, vector<1x1x16x8xf32>
    %10 = vector.shape_cast %9 : vector<1x1x16x8xf32> to vector<16x8xf32>
    %11 = vector.shape_cast %8 : vector<16x8xf32> to vector<1x1x16x8xf32>
    tpu.vector_store %arg6[%c0_8, %c1, %c0_9, %c0_10], %11 {strides = array<i32>} : memref<1x4x16x8xf32, #tpu.memory_space<vmem>>, vector<1x1x16x8xf32>,
    %12 = vector.extract_strided_slice %3 {offsets = [0, 16], sizes = [16, 8], strides = [1, 1]} : vector<16x32xf32> to vector<16x8xf32>
    %c0_11 = arith.constant 0 : index
    %c2 = arith.constant 2 : index
    %c0_12 = arith.constant 0 : index
    %c0_13 = arith.constant 0 : index
    %13 = vector.load %arg6[%c0_11, %c2, %c0_12, %c0_13] : memref<1x4x16x8xf32, #tpu.memory_space<vmem>>, vector<1x1x16x8xf32>
    %14 = vector.shape_cast %13 : vector<1x1x16x8xf32> to vector<16x8xf32>
    %15 = vector.shape_cast %12 : vector<16x8xf32> to vector<1x1x16x8xf32>
    tpu.vector_store %arg6[%c0_11, %c2, %c0_12, %c0_13], %15 {strides = array<i32>} : memref<1x4x16x8xf32, #tpu.memory_space<vmem>>, vector<1x1x16x8xf32>,
    %16 = vector.extract_strided_slice %3 {offsets = [0, 24], sizes = [16, 8], strides = [1, 1]} : vector<16x32xf32> to vector<16x8xf32>
    %c0_14 = arith.constant 0 : index
    %c3 = arith.constant 3 : index
    %c0_15 = arith.constant 0 : index
    %c0_16 = arith.constant 0 : index
    %17 = vector.load %arg6[%c0_14, %c3, %c0_15, %c0_16] : memref<1x4x16x8xf32, #tpu.memory_space<vmem>>, vector<1x1x16x8xf32>
    %18 = vector.shape_cast %17 : vector<1x1x16x8xf32> to vector<16x8xf32>
    %19 = vector.shape_cast %16 : vector<16x8xf32> to vector<1x1x16x8xf32>
    tpu.vector_store %arg6[%c0_14, %c3, %c0_15, %c0_16], %19 {strides = array<i32>} : memref<1x4x16x8xf32, #tpu.memory_space<vmem>>, vector<1x1x16x8xf32>,
    %c0_17 = arith.constant 0 : index
    %c0_18 = arith.constant 0 : index
    %20 = vector.load %arg4[%c0_17, %c0_18] : memref<32x8xf32, #tpu.memory_space<vmem>>, vector<32x8xf32>
    %cst_19 = arith.constant dense<0.000000e+00> : vector<16x8xf32>
    %21 = tpu.matmul %1, %20, %cst_19 {dimension_numbers = #tpu.dot_dimension_numbers<[1], [0], [0], [1], [0, 0, 1, 1], [], []>} : vector<16x32xf32>, vector<32x8xf32>, vector<16x8xf32> -> vector<16x8xf32>
    %c0_20 = arith.constant 0 : index
    %c0_21 = arith.constant 0 : index
    %c0_22 = arith.constant 0 : index
    %22 = vector.load %arg7[%c0_20, %c0_21, %c0_22] : memref<1x16x8xf32, #tpu.memory_space<vmem>>, vector<1x16x8xf32>
    %23 = vector.shape_cast %22 : vector<1x16x8xf32> to vector<16x8xf32>
    %24 = vector.shape_cast %21 : vector<16x8xf32> to vector<1x16x8xf32>
    tpu.vector_store %arg7[%c0_20, %c0_21, %c0_22], %24 {strides = array<i32>} : memref<1x16x8xf32, #tpu.memory_space<vmem>>, vector<1x16x8xf32>,
    %c0_23 = arith.constant 0 : index
    %c0_24 = arith.constant 0 : index
    %25 = vector.load %arg5[%c0_23, %c0_24] : memref<32x8xf32, #tpu.memory_space<vmem>>, vector<32x8xf32>
    %cst_25 = arith.constant dense<0.000000e+00> : vector<16x8xf32>
    %26 = tpu.matmul %1, %25, %cst_25 {dimension_numbers = #tpu.dot_dimension_numbers<[1], [0], [0], [1], [0, 0, 1, 1], [], []>} : vector<16x32xf32>, vector<32x8xf32>, vector<16x8xf32> -> vector<16x8xf32>
    %c0_26 = arith.constant 0 : index
    %c0_27 = arith.constant 0 : index
    %c0_28 = arith.constant 0 : index
    %27 = vector.load %arg8[%c0_26, %c0_27, %c0_28] : memref<1x16x8xf32, #tpu.memory_space<vmem>>, vector<1x16x8xf32>
    %28 = vector.shape_cast %27 : vector<1x16x8xf32> to vector<16x8xf32>
    %29 = vector.shape_cast %26 : vector<16x8xf32> to vector<1x16x8xf32>
    tpu.vector_store %arg8[%c0_26, %c0_27, %c0_28], %29 {strides = array<i32>} : memref<1x16x8xf32, #tpu.memory_space<vmem>>, vector<1x16x8xf32>,
    return
  }
  func.func @transform_0(%arg0: i32, %arg1: i32) -> (i32, i32, i32) {
    %c0_i32 = arith.constant 0 : i32
    %c0_i32_0 = arith.constant 0 : i32
    return %arg0, %arg1, %c0_i32 : i32, i32, i32
  }
  func.func @transform_1(%arg0: i32, %arg1: i32) -> (i32, i32) {
    %c0_i32 = arith.constant 0 : i32
    %c0_i32_0 = arith.constant 0 : i32
    %c0_i32_1 = arith.constant 0 : i32
    return %c0_i32, %c0_i32_0 : i32, i32
  }
  func.func @transform_2(%arg0: i32, %arg1: i32) -> (i32, i32) {
    %c0_i32 = arith.constant 0 : i32
    %c0_i32_0 = arith.constant 0 : i32
    %c0_i32_1 = arith.constant 0 : i32
    return %c0_i32, %c0_i32_0 : i32, i32
  }
  func.func @transform_3(%arg0: i32, %arg1: i32) -> (i32, i32) {
    %c0_i32 = arith.constant 0 : i32
    %c0_i32_0 = arith.constant 0 : i32
    %c0_i32_1 = arith.constant 0 : i32
    return %c0_i32, %c0_i32_0 : i32, i32
  }
  func.func @transform_4(%arg0: i32, %arg1: i32) -> (i32, i32, i32, i32) {
    %c0_i32 = arith.constant 0 : i32
    %c0_i32_0 = arith.constant 0 : i32
    %c0_i32_1 = arith.constant 0 : i32
    return %arg0, %c0_i32, %arg1, %c0_i32_0 : i32, i32, i32, i32
  }
  func.func @transform_5(%arg0: i32, %arg1: i32) -> (i32, i32, i32) {
    %c0_i32 = arith.constant 0 : i32
    %c0_i32_0 = arith.constant 0 : i32
    return %arg0, %arg1, %c0_i32 : i32, i32, i32
  }
  func.func @transform_6(%arg0: i32, %arg1: i32) -> (i32, i32, i32) {
    %c0_i32 = arith.constant 0 : i32
    %c0_i32_0 = arith.constant 0 : i32
    return %arg0, %arg1, %c0_i32 : i32, i32, i32
  }
}

module attributes {stable_mosaic.version = 11 : i64} {
  func.func @_qkv_proj_kernel(%arg0: i32, %arg1: i32, %arg2: memref<1x16x32xf32, #tpu.memory_space<vmem>>, %arg3: memref<32x32xf32, #tpu.memory_space<vmem>>, %arg4: memref<32x8xf32, #tpu.memory_space<vmem>>, %arg5: memref<32x8xf32, #tpu.memory_space<vmem>>, %arg6: memref<1x4x16x8xf32, #tpu.memory_space<vmem>>, %arg7: memref<1x16x8xf32, #tpu.memory_space<vmem>>, %arg8: memref<1x16x8xf32, #tpu.memory_space<vmem>>) attributes {dimension_semantics = [#tpu.dimension_semantics<parallel>, #tpu.dimension_semantics<parallel>], iteration_bounds = array<i64: 2, 2>, scalar_prefetch = 0 : i64, scratch_operands = 0 : i64, tpu.core_type = #tpu.core_type<tc>, window_params = [{transform_indices = @transform_0, window_bounds = array<i64: 1, 16, 32>}, {pipeline_mode = #tpu.pipeline_mode<synchronous>, transform_indices = @transform_1, window_bounds = array<i64: 32, 32>}, {pipeline_mode = #tpu.pipeline_mode<synchronous>, transform_indices = @transform_2, window_bounds = array<i64: 32, 8>}, {pipeline_mode = #tpu.pipeline_mode<synchronous>, transform_indices = @transform_3, window_bounds = array<i64: 32, 8>}, {transform_indices = @transform_4, window_bounds = array<i64: 1, 4, 16, 8>}, {transform_indices = @transform_5, window_bounds = array<i64: 1, 16, 8>}, {transform_indices = @transform_6, window_bounds = array<i64: 1, 16, 8>}]} {
    %c0 = arith.constant 0 : index
    %c0_0 = arith.constant 0 : index
    %c0_1 = arith.constant 0 : index
    %0 = vector.load %arg2[%c0, %c0_0, %c0_1] : memref<1x16x32xf32, #tpu.memory_space<vmem>>, vector<1x16x32xf32>
    %1 = vector.shape_cast %0 : vector<1x16x32xf32> to vector<16x32xf32>
    %c0_2 = arith.constant 0 : index
    %c0_3 = arith.constant 0 : index
    %2 = vector.load %arg3[%c0_2, %c0_3] : memref<32x32xf32, #tpu.memory_space<vmem>>, vector<32x32xf32>
    %cst = arith.constant dense<0.000000e+00> : vector<16x32xf32>
    %3 = tpu.matmul %1, %2, %cst {dimension_numbers = #tpu.dot_dimension_numbers<[1], [0], [0], [1], [0, 0, 1, 1], [], []>} : vector<16x32xf32>, vector<32x32xf32>, vector<16x32xf32> -> vector<16x32xf32>
    %4 = vector.extract_strided_slice %3 {offsets = [0, 0], sizes = [16, 8], strides = [1, 1]} : vector<16x32xf32> to vector<16x8xf32>
    %c0_4 = arith.constant 0 : index
    %c0_5 = arith.constant 0 : index
    %c0_6 = arith.constant 0 : index
    %c0_7 = arith.constant 0 : index
    %5 = vector.load %arg6[%c0_4, %c0_5, %c0_6, %c0_7] : memref<1x4x16x8xf32, #tpu.memory_space<vmem>>, vector<1x1x16x8xf32>
    %6 = vector.shape_cast %5 : vector<1x1x16x8xf32> to vector<16x8xf32>
    %7 = vector.shape_cast %4 : vector<16x8xf32> to vector<1x1x16x8xf32>
    tpu.vector_store %arg6[%c0_4, %c0_5, %c0_6, %c0_7], %7 {strides = array<i32>} : memref<1x4x16x8xf32, #tpu.memory_space<vmem>>, vector<1x1x16x8xf32>,
    %8 = vector.extract_strided_slice %3 {offsets = [0, 8], sizes = [16, 8], strides = [1, 1]} : vector<16x32xf32> to vector<16x8xf32>
    %c0_8 = arith.constant 0 : index
    %c1 = arith.constant 1 : index
    %c0_9 = arith.constant 0 : index
    %c0_10 = arith.constant 0 : index
    %9 = vector.load %arg6[%c0_8, %c1, %c0_9, %c0_10] : memref<1x4x16x8xf32, #tpu.memory_space<vmem>>, vector<1x1x16x8xf32>
    %10 = vector.shape_cast %9 : vector<1x1x16x8xf32> to vector<16x8xf32>
    %11 = vector.shape_cast %8 : vector<16x8xf32> to vector<1x1x16x8xf32>
    tpu.vector_store %arg6[%c0_8, %c1, %c0_9, %c0_10], %11 {strides = array<i32>} : memref<1x4x16x8xf32, #tpu.memory_space<vmem>>, vector<1x1x16x8xf32>,
    %12 = vector.extract_strided_slice %3 {offsets = [0, 16], sizes = [16, 8], strides = [1, 1]} : vector<16x32xf32> to vector<16x8xf32>
    %c0_11 = arith.constant 0 : index
    %c2 = arith.constant 2 : index
    %c0_12 = arith.constant 0 : index
    %c0_13 = arith.constant 0 : index
    %13 = vector.load %arg6[%c0_11, %c2, %c0_12, %c0_13] : memref<1x4x16x8xf32, #tpu.memory_space<vmem>>, vector<1x1x16x8xf32>
    %14 = vector.shape_cast %13 : vector<1x1x16x8xf32> to vector<16x8xf32>
    %15 = vector.shape_cast %12 : vector<16x8xf32> to vector<1x1x16x8xf32>
    tpu.vector_store %arg6[%c0_11, %c2, %c0_12, %c0_13], %15 {strides = array<i32>} : memref<1x4x16x8xf32, #tpu.memory_space<vmem>>, vector<1x1x16x8xf32>,
    %16 = vector.extract_strided_slice %3 {offsets = [0, 24], sizes = [16, 8], strides = [1, 1]} : vector<16x32xf32> to vector<16x8xf32>
    %c0_14 = arith.constant 0 : index
    %c3 = arith.constant 3 : index
    %c0_15 = arith.constant 0 : index
    %c0_16 = arith.constant 0 : index
    %17 = vector.load %arg6[%c0_14, %c3, %c0_15, %c0_16] : memref<1x4x16x8xf32, #tpu.memory_space<vmem>>, vector<1x1x16x8xf32>
    %18 = vector.shape_cast %17 : vector<1x1x16x8xf32> to vector<16x8xf32>
    %19 = vector.shape_cast %16 : vector<16x8xf32> to vector<1x1x16x8xf32>
    tpu.vector_store %arg6[%c0_14, %c3, %c0_15, %c0_16], %19 {strides = array<i32>} : memref<1x4x16x8xf32, #tpu.memory_space<vmem>>, vector<1x1x16x8xf32>,
    %c0_17 = arith.constant 0 : index
    %c0_18 = arith.constant 0 : index
    %20 = vector.load %arg4[%c0_17, %c0_18] : memref<32x8xf32, #tpu.memory_space<vmem>>, vector<32x8xf32>
    %cst_19 = arith.constant dense<0.000000e+00> : vector<16x8xf32>
    %21 = tpu.matmul %1, %20, %cst_19 {dimension_numbers = #tpu.dot_dimension_numbers<[1], [0], [0], [1], [0, 0, 1, 1], [], []>} : vector<16x32xf32>, vector<32x8xf32>, vector<16x8xf32> -> vector<16x8xf32>
    %c0_20 = arith.constant 0 : index
    %c0_21 = arith.constant 0 : index
    %c0_22 = arith.constant 0 : index
    %22 = vector.load %arg7[%c0_20, %c0_21, %c0_22] : memref<1x16x8xf32, #tpu.memory_space<vmem>>, vector<1x16x8xf32>
    %23 = vector.shape_cast %22 : vector<1x16x8xf32> to vector<16x8xf32>
    %24 = vector.shape_cast %21 : vector<16x8xf32> to vector<1x16x8xf32>
    tpu.vector_store %arg7[%c0_20, %c0_21, %c0_22], %24 {strides = array<i32>} : memref<1x16x8xf32, #tpu.memory_space<vmem>>, vector<1x16x8xf32>,
    %c0_23 = arith.constant 0 : index
    %c0_24 = arith.constant 0 : index
    %25 = vector.load %arg5[%c0_23, %c0_24] : memref<32x8xf32, #tpu.memory_space<vmem>>, vector<32x8xf32>
    %cst_25 = arith.constant dense<0.000000e+00> : vector<16x8xf32>
    %26 = tpu.matmul %1, %25, %cst_25 {dimension_numbers = #tpu.dot_dimension_numbers<[1], [0], [0], [1], [0, 0, 1, 1], [], []>} : vector<16x32xf32>, vector<32x8xf32>, vector<16x8xf32> -> vector<16x8xf32>
    %c0_26 = arith.constant 0 : index
    %c0_27 = arith.constant 0 : index
    %c0_28 = arith.constant 0 : index
    %27 = vector.load %arg8[%c0_26, %c0_27, %c0_28] : memref<1x16x8xf32, #tpu.memory_space<vmem>>, vector<1x16x8xf32>
    %28 = vector.shape_cast %27 : vector<1x16x8xf32> to vector<16x8xf32>
    %29 = vector.shape_cast %26 : vector<16x8xf32> to vector<1x16x8xf32>
    tpu.vector_store %arg8[%c0_26, %c0_27, %c0_28], %29 {strides = array<i32>} : memref<1x16x8xf32, #tpu.memory_space<vmem>>, vector<1x16x8xf32>,
    return
  }
  func.func @transform_0(%arg0: i32, %arg1: i32) -> (i32, i32, i32) {
    %c0_i32 = arith.constant 0 : i32
    %c0_i32_0 = arith.constant 0 : i32
    return %arg0, %arg1, %c0_i32 : i32, i32, i32
  }
  func.func @transform_1(%arg0: i32, %arg1: i32) -> (i32, i32) {
    %c0_i32 = arith.constant 0 : i32
    %c0_i32_0 = arith.constant 0 : i32
    %c0_i32_1 = arith.constant 0 : i32
    return %c0_i32, %c0_i32_0 : i32, i32
  }
  func.func @transform_2(%arg0: i32, %arg1: i32) -> (i32, i32) {
    %c0_i32 = arith.constant 0 : i32
    %c0_i32_0 = arith.constant 0 : i32
    %c0_i32_1 = arith.constant 0 : i32
    return %c0_i32, %c0_i32_0 : i32, i32
  }
  func.func @transform_3(%arg0: i32, %arg1: i32) -> (i32, i32) {
    %c0_i32 = arith.constant 0 : i32
    %c0_i32_0 = arith.constant 0 : i32
    %c0_i32_1 = arith.constant 0 : i32
    return %c0_i32, %c0_i32_0 : i32, i32
  }
  func.func @transform_4(%arg0: i32, %arg1: i32) -> (i32, i32, i32, i32) {
    %c0_i32 = arith.constant 0 : i32
    %c0_i32_0 = arith.constant 0 : i32
    %c0_i32_1 = arith.constant 0 : i32
    return %arg0, %c0_i32, %arg1, %c0_i32_0 : i32, i32, i32, i32
  }
  func.func @transform_5(%arg0: i32, %arg1: i32) -> (i32, i32, i32) {
    %c0_i32 = arith.constant 0 : i32
    %c0_i32_0 = arith.constant 0 : i32
    return %arg0, %arg1, %c0_i32 : i32, i32, i32
  }
  func.func @transform_6(%arg0: i32, %arg1: i32) -> (i32, i32, i32) {
    %c0_i32 = arith.constant 0 : i32
    %c0_i32_0 = arith.constant 0 : i32
    return %arg0, %arg1, %c0_i32 : i32, i32, i32
  }
}

</mosaic_0001>

<bundles_post_ra>
// kernel: tpu_custom_call.1
= control target key start
LH: loop header
LB: loop body
LE: loop exit
PB: predicated region body
PF: predicated region fallthrough
CT: control target
= control target key end

     0   :  { %12 = vsyncpa [#allocation3], 0  ;;  %s1187_s21 = smov 0   ;;  %s1189_s22 = smov 0   ;;  %s1394_s0 = inlined_call_operand.vmem [shape: f32[2,32,32], index: 0, kind: input, shape index: {}]   ;;  %s1395_s1 = inlined_call_operand.hbm [shape: f32[32,32], index: 1, kind: input, shape index: {}]   ;;  %s1396_s2 = inlined_call_operand.vmem [shape: f32[32,8], index: 2, kind: input, shape index: {}]   ;;  %s1397_s3 = inlined_call_operand.vmem [shape: f32[32,8], index: 3, kind: input, shape index: {}]   ;;  %s1398_s4 = inlined_call_operand.vmem [shape: f32[2,4,32,8], index: 4, kind: output, shape index: {0}]   ;;  %s1399_s5 = inlined_call_operand.vmem [shape: f32[2,32,8], index: 5, kind: output, shape index: {1}]   ;;  %s1400_s6 = inlined_call_operand.vmem [shape: f32[2,32,8], index: 6, kind: output, shape index: {2}]  }
   0x1   :  { %s1191_s23 = smov 0   ;;  %s1193_s24 = smov 0  }
   0x2   :  { %s1195_s25 = smov 0   ;;  %s1197_s26 = smov 0  }
   0x3   :  { %s1199_s27 = smov 0  }
   0x4 LB: > { %s876_s28 = sadd.s32 4294967295, %s1144_s27   ;;  %s27_s29 = sadd.s32 1, %s1136_s25  ;;  %s1144_s27 = sphi %s1199_s27, %s18_s27   ;;  %s1140_s26 = sphi %s1197_s26, %s1416_s26   ;;  %s1136_s25 = sphi %s1195_s25, %s1415_s25   ;;  %s1132_s24 = sphi %s1193_s24, %s1414_s24   ;;  %s1128_s23 = sphi %s1191_s23, %s1413_s23   ;;  %s1124_s22 = sphi %s1189_s22, %s1412_s22   ;;  %s1120_s21 = sphi %s1187_s21, %s1411_s21  }
   0x5   : > { %p28_p0 = scmp.ge.s32.totalorder %s27_s29, 2  ;;  %s30_s30 = sadd.s32 1, %s1140_s26 }
   0x6   : > { %s130_s7 = sadd.s32 1, %s1124_s22  ;;  %p140_p1 = scmp.ne.s32.totalorder %s1124_s22, %s1120_s21 }
   0x7   : > { %s1418_s29 = smov (%p28_p0, %s27_s29), 0  ;;  %s1420_s30 = smov (!%p28_p0, %s30_s30), %s1140_s26 }
   0x8   : > { %s126_s8 = ssub.s32 %s1136_s25, %s1418_s29  ;;  %p141_p2 = scmp.eq.s32.totalorder %s876_s28, 3 }
   0x9   : > { %p32_p3 = scmp.ge.s32.totalorder %s1420_s30, 2  ;;  %p878_p4 = scmp.ge.s32.totalorder %s1144_s27, 1 }
   0xa   : > { %p1234_p5 = por %p141_p2, %p140_p1  ;;  %p210_p6 = scmp.lt.s32.totalorder %s1144_s27, 5 }
   0xb   : > { %s1422_s30 = smov (%p32_p3, %s1420_s30), 0  ;;  %p1247_p8 = scmp.eq.s32.totalorder %s876_s28, 0 }
   0xc   : > { %s1404_s9 = scalar_select %p1234_p5, 1, 0 }
   0xd   : > { %p1241_p7 = pnand %p878_p4, %p210_p6  ;;  %s125_s11 = ssub.s32 %s1140_s26, %s1422_s30 }
   0xe   : > { %s1406_s12 = scalar_select %p1247_p8, 1, 0 }
   0xf   : > { %s1405_s10 = scalar_select %p1241_p7, 1, 0 }
  0x10   : > { %s127_s13 = sor.u32 %s126_s8, %s125_s11  ;;  %p990_p9 = pneg %p1241_p7 }
  0x11   : > { %p128_p10 = scmp.eq.s32.totalorder %s127_s13, 0  ;;  %s1146_s14 = smov [#allocation2]  }
  0x12   : > { %s222_s15 = sshll.u32 %s1146_s14, 4  ;;  %p1255_p11 = pnand %p1247_p8, %p990_p9  ;;  %s223_s15 = int_to_ptr.vmem [resolvable:$true] %s222_s15 }
  0x13   : > { %s1260_s17 = scalar_select %p128_p10, %s1124_s22, %s130_s7  }
  0x14   : > { %s1058_s20 = scalar_lea.hbm %s1395_s1, 512  ;;  %p1060_p13 = pneg %p1255_p11 }
  0x15   : > { %p1059_p12 = scmp.ne.s32.totalorder %s1395_s1, %s1058_s20  ;;  %p1065_p2 = scmp.lt.u32.totalorder %s1058_s20, %s1395_s1 }
  0x17   : > { %p1061_p0 = pnand %p1060_p13, %p1059_p12 }
  0x19   : > { %p1062_p1 = pneg %p1061_p0 }
  0x1b   : > { %p1067_p3 = pnand %p1065_p2, %p1062_p1 }
  0x1d   : > { %1070 = shalt.err (!%p1067_p3)
}
  0x1e   : > { %s1071_s7 = scalar_lea.vmem %s223_s15, 512  ;;  %p1079_p10 = scmp.lt.s32.totalorder %s223_s15, %s223_s15 }
  0x1f   : > { %p1072_p4 = scmp.ne.s32.totalorder %s223_s15, %s1071_s7  ;;  %p1080_p5 = scmp.lt.s32.totalorder %s1071_s7, %s1071_s7 }
  0x21   : > { %p1074_p6 = pnand %p1072_p4, %p1060_p13  ;;  %p1081_p8 = por %p1080_p5, %p1079_p10 }
  0x23   : > { %p1075_p9 = pneg %p1074_p6 }
  0x25   : > { %p1082_p7 = pnand %p1081_p8, %p1075_p9 }
  0x27   : > { %1085 = shalt.err (!%p1082_p7)
}
  0x28   : > { %s1147_s14 = smov 128   ;;  %s1148_s18 = smov 8  }
  0x29   : > { %993 = dma.hbm_to_vmem [thread:$0]  (!%p1255_p11), %s1395_s1, 512, %s223_s15, [#allocation3], %s1147_s14, %s1147_s14, %s1148_s18  }
  0x2a   : > { %p1408_p12 = scmp.ne.s32.totalorder %s1405_s10, 0 }
  0x2b   : > { %p1409_p0 = scmp.ne.s32.totalorder (!%p1408_p12), %s1406_s12, 0 }
  0x2c   : > { %257 = sbr.rel (%p1408_p12) target bundleno = 409 (0x199), region = 36 }
  0x33   : > { %1115 = dma.done.wait (%p1409_p0), [#allocation3], 512  }
  0x34   : > { %1117 = vsyncadd (%p1409_p0), [#allocation3], 4294966784  ;;  %s1285_s20 = sshll.u32 %s1128_s23, 1  ;;  %p309_p5 = scmp.lt.s32.totalorder %s1132_s24, 1  ;;  %vm345_vm0 = vcmask 261120   ;;  %v341_v0 = vld [vmem:[#allocation2] sm:$0xff] }
  0x35   : > { %p311_p7 = scmp.lt.s32.totalorder %s1285_s20, 3  ;;  %v342_v1 = vld [vmem:[#allocation2 + $0x8] sm:$0xff]  ;;  %v343_v2 = vld [vmem:[#allocation2 + $0x10] sm:$0xff]  ;;  %v344_v4 = vld [vmem:[#allocation2 + $0x18] sm:$0xff]  ;;  %vm427_vm1 = vcmask 64512   ;;  %s1149_s13 = smov 112  }
  0x36   : > { %s310_s16 = scalar_select %p309_p5, %s1132_s24, 1  ;;  %v962_v3 = vpack.c.bf16 %v342_v1, %v341_v0  ;;  %v966_v6 = vpack.c.bf16 %v344_v4, %v343_v2  ;;  %v459_v7 = vld [vmem:[%s1396_s2] sm:$0xff]  ;;  %v460_v8 = vld [vmem:[%s1396_s2 + $0x8] sm:$0xff]  ;;  %v461_v12 = vld [vmem:[%s1396_s2 + $0x10] sm:$0xff] }
  0x37   : > { %s312_s15 = scalar_select %p311_p7, %s1285_s20, 3  ;;  %v540_v9 = vld [vmem:[%s1397_s3] sm:$0xff]  ;;  %v970_v10 = vpack.c.bf16 %v460_v8, %v459_v7  ;;  %v541_v11 = vld [vmem:[%s1397_s3 + $0x8] sm:$0xff]  ;;  %v462_v13 = vld [vmem:[%s1396_s2 + $0x18] sm:$0xff] }
  0x38   : > { %s885_s8 = sshll.u32 %s310_s16, 2  ;;  %963 = vmatprep.subr.bf16.mxu0 %v962_v3  ;;  %v974_v14 = vpack.c.bf16 %v462_v13, %v461_v12  ;;  %v978_v15 = vpack.c.bf16 %v541_v11, %v540_v9  ;;  %v542_v16 = vld [vmem:[%s1397_s3 + $0x10] sm:$0xff]  ;;  %v543_v17 = vld [vmem:[%s1397_s3 + $0x18] sm:$0xff]  ;;  %s283_s16 = sand.u32 1, %s1120_s21  }
  0x39   : > { %s314_s10 = sadd.s32 %s885_s8, %s312_s15  ;;  %965 = vmatpush3.bf16.msra.mxu0 %v962_v3  ;;  %971 = vmatprep.subr.bf16.mxu1 %v970_v10  ;;  %v982_v19 = vpack.c.bf16 %v543_v17, %v542_v16  ;;  %s883_s15 = sshll.u32 %s283_s16, 6 }
  0x3a   : > { %s1291_s11 = sshll.u32 %s314_s10, 3  ;;  %967 = vmatprep.subr.bf16.mxu0 %v966_v6  ;;  %973 = vmatpush3.bf16.msra.mxu1 %v970_v10  ;;  %s1332_s12 = scalar_lea.vmem [#allocation4], %s883_s15 }
  0x3b   : > { %s316_s23 = scalar_lea.vmem %s1394_s0, %s1291_s11  ;;  %975 = vmatprep.subr.bf16.mxu1 %v974_v14  ;;  %s1150_s7 = smov 120  }
  0x3c   : > { %v339_v5 = vld [vmem:[%s316_s23] sm:$0xff]  ;;  %v340_v18 = vld [vmem:[%s316_s23 + $0x8] sm:$0xff]  ;;  %s327_s23 = scalar_lea.vmem %s1399_s5, %s1291_s11  ;;  %s337_s18 = scalar_lea.vmem %s1400_s6, %s1291_s11 }
  0x3d   : > { %937 = vmatprep.mubr.msk.f32.mxu0 %vm345_vm0, %v339_v5  ;;  %948 = vmatprep.mubr.msk.f32.mxu1 %vm345_vm0, %v339_v5  ;;  %s1151_s19 = smov 104   ;;  %p1410_p8 = scmp.ne.s32.totalorder %s1404_s9, 0 }
  0x3e   : > { %969 = vmatpush3.bf16.msra.mxu0 %v966_v6  ;;  %977 = vmatpush3.bf16.msra.mxu1 %v974_v14  ;;  %s907_s11 = sshll.u32 (%p1410_p8), %s1132_s24, 4 }
  0x3f   : > { %979 = vmatprep.subr.bf16.mxu0 %v978_v15  ;;  %s648_s28 = sadd.s32 (%p1410_p8), %s907_s11, %s1285_s20 }
  0x40   : > { %s908_s9 = sshll.u32 (%p1410_p8), %s648_s28, 3 }
  0x41   : > { %938 = vmatmul.mubr.msk.f32.vlgmr.msra.gmra.mrb[0].mxu0 %vm345_vm0, %v340_v18  ;;  %949 = vmatmul.mubr.msk.f32.vlgmr.msra.gmra.mrb[0].mxu1 %vm345_vm0, %v340_v18  ;;  %s650_s8 = scalar_lea.vmem (%p1410_p8), %s1398_s4, %s908_s9 }
  0x42   : > { %981 = vmatpush3.bf16.msra.mxu0 %v978_v15  ;;  %959 = vmatprep.mubr.msk.f32.mxu0 %vm345_vm0, %v339_v5 }
  0x43   : > { %983 = vmatprep.subr.bf16.mxu0 %v982_v19 }
  0x46   : > { %985 = vmatpush3.bf16.msra.mxu0 %v982_v19 }
  0x49   : > { %960 = vmatmul.mubr.msk.f32.vlgmr.msra.gmra.mrb[2].mxu0 %vm345_vm0, %v340_v18 }
 0x114   : > { %v939_v20 = vpop.f32.mrb[0].mxu0  ;;  %v950_v22 = vpop.f32.mrb[0].mxu1 }
 0x115   : > { %429 = vst.msk [vmem:[%s1332_s12 + $0x8] sm:$0xff] %vm427_vm1, %v939_v20  ;;  %443 = vrot.lane.b32.xlu1 %v939_v20, %s1149_s13  ;;  %434 = vrot.lane.b32.xlu0 %v939_v20, %s1150_s7  ;;  %v418_v21 = vpop.f32.mrb[1].mxu0  ;;  %539 = vst.msk [vmem:[%s327_s23 + $0x8] sm:$0xff] %vm427_vm1, %v950_v22  ;;  %v529_v23 = vpop.f32.mrb[1].mxu1 }
 0x116   : > { %428 = vst.msk [vmem:[%s1332_s12] sm:$0xff] %vm427_vm1, %v418_v21  ;;  %538 = vst.msk [vmem:[%s327_s23] sm:$0xff] %vm427_vm1, %v529_v23 }
 0x119   : > { %441 = vrot.lane.b32.xlu1 %v418_v21, %s1149_s13  ;;  %432 = vrot.lane.b32.xlu0 %v418_v21, %s1150_s7 }
 0x11c   : > { %v961_v24 = vpop.f32.mrb[2].mxu0  ;;  %v694_v33 = vld [vmem:[%s1332_s12 + $0x8] sm:$0xff] (%p1410_p8) }
 0x11d   : > { %452 = vrot.lane.b32.xlu1 %v939_v20, %s1151_s19  ;;  %450 = vrot.lane.b32.xlu0 %v418_v21, %s1151_s19  ;;  %620 = vst.msk [vmem:[%s337_s18 + $0x8] sm:$0xff] %vm427_vm1, %v961_v24  ;;  %v610_v25 = vpop.f32.mrb[3].mxu0  ;;  %v692_v32 = vld [vmem:[%s1332_s12] sm:$0xff] (%p1410_p8) }
 0x11e   : > { %619 = vst.msk [vmem:[%s337_s18] sm:$0xff] %vm427_vm1, %v610_v25  ;;  %693 = vst [vmem:[%s650_s8] sm:$0xff] (%p1410_p8), %v692_v32 }
 0x11f   : > { %695 = vst [vmem:[%s650_s8 + $0x8] sm:$0xff] (%p1410_p8), %v694_v33 }
 0x187   : > { %v444_v26 = vpop.permute.xlu1 %443  ;;  %v435_v27 = vpop.permute.xlu0 %434 }
 0x188   : > { %898 = vst.msk [vmem:[%s1332_s12 + $0x28] sm:$0xff] %vm427_vm1, %v444_v26  ;;  %896 = vst.msk [vmem:[%s1332_s12 + $0x18] sm:$0xff] %vm427_vm1, %v435_v27 }
 0x18a   : > { %645 = sbr.rel (!%p1410_p8) target bundleno = 409 (0x199), region = 44 }
 0x18b   : > { %v442_v28 = vpop.permute.xlu1 %441  ;;  %v433_v29 = vpop.permute.xlu0 %432 }
 0x18c   : > { %897 = vst.msk [vmem:[%s1332_s12 + $0x20] sm:$0xff] %vm427_vm1, %v442_v28  ;;  %895 = vst.msk [vmem:[%s1332_s12 + $0x10] sm:$0xff] %vm427_vm1, %v433_v29 }
 0x18f   : > { %v453_v30 = vpop.permute.xlu1 %452  ;;  %v451_v31 = vpop.permute.xlu0 %450  ;;  %v698_v35 = vld [vmem:[%s1332_s12 + $0x18] sm:$0xff] (%p1410_p8)  ;;  %v702_v37 = vld [vmem:[%s1332_s12 + $0x28] sm:$0xff] (%p1410_p8) }
 0x190   : > { %900 = vst.msk [vmem:[%s1332_s12 + $0x38] sm:$0xff] %vm427_vm1, %v453_v30  ;;  %899 = vst.msk [vmem:[%s1332_s12 + $0x30] sm:$0xff] %vm427_vm1, %v451_v31 }
 0x191   : > { %699 = vst [vmem:[%s650_s8 + $0x28] sm:$0xff] %v698_v35  ;;  %703 = vst [vmem:[%s650_s8 + $0x48] sm:$0xff] %v702_v37 }
 0x193   : > { %v696_v34 = vld [vmem:[%s1332_s12 + $0x10] sm:$0xff]  ;;  %v700_v36 = vld [vmem:[%s1332_s12 + $0x20] sm:$0xff] }
 0x194   : > { %697 = vst [vmem:[%s650_s8 + $0x20] sm:$0xff] %v696_v34  ;;  %701 = vst [vmem:[%s650_s8 + $0x40] sm:$0xff] %v700_v36 }
 0x197   : > { %v704_v38 = vld [vmem:[%s1332_s12 + $0x30] sm:$0xff]  ;;  %v706_v39 = vld [vmem:[%s1332_s12 + $0x38] sm:$0xff] }
 0x198   : > { %705 = vst [vmem:[%s650_s8 + $0x60] sm:$0xff] %v704_v38  ;;  %707 = vst [vmem:[%s650_s8 + $0x68] sm:$0xff] %v706_v39 }
 0x199 PF: > { %s18_s27 = sadd.s32 1, %s1144_s27   ;;  %s1411_s21 = smov %s1124_s22 }
 0x19a   : > { %p15_p11 = scmp.ge.s32.totalorder %s18_s27, 6   ;;  %s1412_s22 = smov %s1260_s17 }
 0x19b   : > { %s1413_s23 = smov %s1136_s25  ;;  %s1414_s24 = smov %s1140_s26 }
 0x19c   : > { %s1415_s25 = smov %s1418_s29  ;;  %s1416_s26 = smov %s1422_s30 }
 0x19d   :  { %17 = sbr.rel (!%p15_p11) target bundleno = 4 (0x4), region = 136 }
 0x1a4   :  { %755 = vsyncpa [#allocation3], 1 }
 0x1a5   :  { %757 = vsyncpa [#allocation3 + $0x1], 1 }

// kernel: tpu_custom_call.1
= control target key start
LH: loop header
LB: loop body
LE: loop exit
PB: predicated region body
PF: predicated region fallthrough
CT: control target
= control target key end

     0   :  { %12 = vsyncpa [#allocation3], 0  ;;  %s1187_s21 = smov 0   ;;  %s1189_s22 = smov 0   ;;  %s1394_s0 = inlined_call_operand.vmem [shape: f32[2,32,32], index: 0, kind: input, shape index: {}]   ;;  %s1395_s1 = inlined_call_operand.hbm [shape: f32[32,32], index: 1, kind: input, shape index: {}]   ;;  %s1396_s2 = inlined_call_operand.vmem [shape: f32[32,8], index: 2, kind: input, shape index: {}]   ;;  %s1397_s3 = inlined_call_operand.vmem [shape: f32[32,8], index: 3, kind: input, shape index: {}]   ;;  %s1398_s4 = inlined_call_operand.vmem [shape: f32[2,4,32,8], index: 4, kind: output, shape index: {0}]   ;;  %s1399_s5 = inlined_call_operand.vmem [shape: f32[2,32,8], index: 5, kind: output, shape index: {1}]   ;;  %s1400_s6 = inlined_call_operand.vmem [shape: f32[2,32,8], index: 6, kind: output, shape index: {2}]  }
   0x1   :  { %s1191_s23 = smov 0   ;;  %s1193_s24 = smov 0  }
   0x2   :  { %s1195_s25 = smov 0   ;;  %s1197_s26 = smov 0  }
   0x3   :  { %s1199_s27 = smov 0  }
   0x4 LB: > { %s876_s28 = sadd.s32 4294967295, %s1144_s27   ;;  %s27_s29 = sadd.s32 1, %s1136_s25  ;;  %s1144_s27 = sphi %s1199_s27, %s18_s27   ;;  %s1140_s26 = sphi %s1197_s26, %s1416_s26   ;;  %s1136_s25 = sphi %s1195_s25, %s1415_s25   ;;  %s1132_s24 = sphi %s1193_s24, %s1414_s24   ;;  %s1128_s23 = sphi %s1191_s23, %s1413_s23   ;;  %s1124_s22 = sphi %s1189_s22, %s1412_s22   ;;  %s1120_s21 = sphi %s1187_s21, %s1411_s21  }
   0x5   : > { %p28_p0 = scmp.ge.s32.totalorder %s27_s29, 2  ;;  %s30_s30 = sadd.s32 1, %s1140_s26 }
   0x6   : > { %s130_s7 = sadd.s32 1, %s1124_s22  ;;  %p140_p1 = scmp.ne.s32.totalorder %s1124_s22, %s1120_s21 }
   0x7   : > { %s1418_s29 = smov (%p28_p0, %s27_s29), 0  ;;  %s1420_s30 = smov (!%p28_p0, %s30_s30), %s1140_s26 }
   0x8   : > { %s126_s8 = ssub.s32 %s1136_s25, %s1418_s29  ;;  %p141_p2 = scmp.eq.s32.totalorder %s876_s28, 3 }
   0x9   : > { %p32_p3 = scmp.ge.s32.totalorder %s1420_s30, 2  ;;  %p878_p4 = scmp.ge.s32.totalorder %s1144_s27, 1 }
   0xa   : > { %p1234_p5 = por %p141_p2, %p140_p1  ;;  %p210_p6 = scmp.lt.s32.totalorder %s1144_s27, 5 }
   0xb   : > { %s1422_s30 = smov (%p32_p3, %s1420_s30), 0  ;;  %p1247_p8 = scmp.eq.s32.totalorder %s876_s28, 0 }
   0xc   : > { %s1404_s9 = scalar_select %p1234_p5, 1, 0 }
   0xd   : > { %p1241_p7 = pnand %p878_p4, %p210_p6  ;;  %s125_s11 = ssub.s32 %s1140_s26, %s1422_s30 }
   0xe   : > { %s1406_s12 = scalar_select %p1247_p8, 1, 0 }
   0xf   : > { %s1405_s10 = scalar_select %p1241_p7, 1, 0 }
  0x10   : > { %s127_s13 = sor.u32 %s126_s8, %s125_s11  ;;  %p990_p9 = pneg %p1241_p7 }
  0x11   : > { %p128_p10 = scmp.eq.s32.totalorder %s127_s13, 0  ;;  %s1146_s14 = smov [#allocation2]  }
  0x12   : > { %s222_s15 = sshll.u32 %s1146_s14, 4  ;;  %p1255_p11 = pnand %p1247_p8, %p990_p9  ;;  %s223_s15 = int_to_ptr.vmem [resolvable:$true] %s222_s15 }
  0x13   : > { %s1260_s17 = scalar_select %p128_p10, %s1124_s22, %s130_s7  }
  0x14   : > { %s1058_s20 = scalar_lea.hbm %s1395_s1, 512  ;;  %p1060_p13 = pneg %p1255_p11 }
  0x15   : > { %p1059_p12 = scmp.ne.s32.totalorder %s1395_s1, %s1058_s20  ;;  %p1065_p2 = scmp.lt.u32.totalorder %s1058_s20, %s1395_s1 }
  0x17   : > { %p1061_p0 = pnand %p1060_p13, %p1059_p12 }
  0x19   : > { %p1062_p1 = pneg %p1061_p0 }
  0x1b   : > { %p1067_p3 = pnand %p1065_p2, %p1062_p1 }
  0x1d   : > { %1070 = shalt.err (!%p1067_p3)
}
  0x1e   : > { %s1071_s7 = scalar_lea.vmem %s223_s15, 512  ;;  %p1079_p10 = scmp.lt.s32.totalorder %s223_s15, %s223_s15 }
  0x1f   : > { %p1072_p4 = scmp.ne.s32.totalorder %s223_s15, %s1071_s7  ;;  %p1080_p5 = scmp.lt.s32.totalorder %s1071_s7, %s1071_s7 }
  0x21   : > { %p1074_p6 = pnand %p1072_p4, %p1060_p13  ;;  %p1081_p8 = por %p1080_p5, %p1079_p10 }
  0x23   : > { %p1075_p9 = pneg %p1074_p6 }
  0x25   : > { %p1082_p7 = pnand %p1081_p8, %p1075_p9 }
  0x27   : > { %1085 = shalt.err (!%p1082_p7)
}
  0x28   : > { %s1147_s14 = smov 128   ;;  %s1148_s18 = smov 8  }
  0x29   : > { %993 = dma.hbm_to_vmem [thread:$0]  (!%p1255_p11), %s1395_s1, 512, %s223_s15, [#allocation3], %s1147_s14, %s1147_s14, %s1148_s18  }
  0x2a   : > { %p1408_p12 = scmp.ne.s32.totalorder %s1405_s10, 0 }
  0x2b   : > { %p1409_p0 = scmp.ne.s32.totalorder (!%p1408_p12), %s1406_s12, 0 }
  0x2c   : > { %257 = sbr.rel (%p1408_p12) target bundleno = 409 (0x199), region = 36 }
  0x33   : > { %1115 = dma.done.wait (%p1409_p0), [#allocation3], 512  }
  0x34   : > { %1117 = vsyncadd (%p1409_p0), [#allocation3], 4294966784  ;;  %s1285_s20 = sshll.u32 %s1128_s23, 1  ;;  %p309_p5 = scmp.lt.s32.totalorder %s1132_s24, 1  ;;  %vm345_vm0 = vcmask 261120   ;;  %v341_v0 = vld [vmem:[#allocation2] sm:$0xff] }
  0x35   : > { %p311_p7 = scmp.lt.s32.totalorder %s1285_s20, 3  ;;  %v342_v1 = vld [vmem:[#allocation2 + $0x8] sm:$0xff]  ;;  %v343_v2 = vld [vmem:[#allocation2 + $0x10] sm:$0xff]  ;;  %v344_v4 = vld [vmem:[#allocation2 + $0x18] sm:$0xff]  ;;  %vm427_vm1 = vcmask 64512   ;;  %s1149_s13 = smov 112  }
  0x36   : > { %s310_s16 = scalar_select %p309_p5, %s1132_s24, 1  ;;  %v962_v3 = vpack.c.bf16 %v342_v1, %v341_v0  ;;  %v966_v6 = vpack.c.bf16 %v344_v4, %v343_v2  ;;  %v459_v7 = vld [vmem:[%s1396_s2] sm:$0xff]  ;;  %v460_v8 = vld [vmem:[%s1396_s2 + $0x8] sm:$0xff]  ;;  %v461_v12 = vld [vmem:[%s1396_s2 + $0x10] sm:$0xff] }
  0x37   : > { %s312_s15 = scalar_select %p311_p7, %s1285_s20, 3  ;;  %v540_v9 = vld [vmem:[%s1397_s3] sm:$0xff]  ;;  %v970_v10 = vpack.c.bf16 %v460_v8, %v459_v7  ;;  %v541_v11 = vld [vmem:[%s1397_s3 + $0x8] sm:$0xff]  ;;  %v462_v13 = vld [vmem:[%s1396_s2 + $0x18] sm:$0xff] }
  0x38   : > { %s885_s8 = sshll.u32 %s310_s16, 2  ;;  %963 = vmatprep.subr.bf16.mxu0 %v962_v3  ;;  %v974_v14 = vpack.c.bf16 %v462_v13, %v461_v12  ;;  %v978_v15 = vpack.c.bf16 %v541_v11, %v540_v9  ;;  %v542_v16 = vld [vmem:[%s1397_s3 + $0x10] sm:$0xff]  ;;  %v543_v17 = vld [vmem:[%s1397_s3 + $0x18] sm:$0xff]  ;;  %s283_s16 = sand.u32 1, %s1120_s21  }
  0x39   : > { %s314_s10 = sadd.s32 %s885_s8, %s312_s15  ;;  %965 = vmatpush3.bf16.msra.mxu0 %v962_v3  ;;  %971 = vmatprep.subr.bf16.mxu1 %v970_v10  ;;  %v982_v19 = vpack.c.bf16 %v543_v17, %v542_v16  ;;  %s883_s15 = sshll.u32 %s283_s16, 6 }
  0x3a   : > { %s1291_s11 = sshll.u32 %s314_s10, 3  ;;  %967 = vmatprep.subr.bf16.mxu0 %v966_v6  ;;  %973 = vmatpush3.bf16.msra.mxu1 %v970_v10  ;;  %s1332_s12 = scalar_lea.vmem [#allocation4], %s883_s15 }
  0x3b   : > { %s316_s23 = scalar_lea.vmem %s1394_s0, %s1291_s11  ;;  %975 = vmatprep.subr.bf16.mxu1 %v974_v14  ;;  %s1150_s7 = smov 120  }
  0x3c   : > { %v339_v5 = vld [vmem:[%s316_s23] sm:$0xff]  ;;  %v340_v18 = vld [vmem:[%s316_s23 + $0x8] sm:$0xff]  ;;  %s327_s23 = scalar_lea.vmem %s1399_s5, %s1291_s11  ;;  %s337_s18 = scalar_lea.vmem %s1400_s6, %s1291_s11 }
  0x3d   : > { %937 = vmatprep.mubr.msk.f32.mxu0 %vm345_vm0, %v339_v5  ;;  %948 = vmatprep.mubr.msk.f32.mxu1 %vm345_vm0, %v339_v5  ;;  %s1151_s19 = smov 104   ;;  %p1410_p8 = scmp.ne.s32.totalorder %s1404_s9, 0 }
  0x3e   : > { %969 = vmatpush3.bf16.msra.mxu0 %v966_v6  ;;  %977 = vmatpush3.bf16.msra.mxu1 %v974_v14  ;;  %s907_s11 = sshll.u32 (%p1410_p8), %s1132_s24, 4 }
  0x3f   : > { %979 = vmatprep.subr.bf16.mxu0 %v978_v15  ;;  %s648_s28 = sadd.s32 (%p1410_p8), %s907_s11, %s1285_s20 }
  0x40   : > { %s908_s9 = sshll.u32 (%p1410_p8), %s648_s28, 3 }
  0x41   : > { %938 = vmatmul.mubr.msk.f32.vlgmr.msra.gmra.mrb[0].mxu0 %vm345_vm0, %v340_v18  ;;  %949 = vmatmul.mubr.msk.f32.vlgmr.msra.gmra.mrb[0].mxu1 %vm345_vm0, %v340_v18  ;;  %s650_s8 = scalar_lea.vmem (%p1410_p8), %s1398_s4, %s908_s9 }
  0x42   : > { %981 = vmatpush3.bf16.msra.mxu0 %v978_v15  ;;  %959 = vmatprep.mubr.msk.f32.mxu0 %vm345_vm0, %v339_v5 }
  0x43   : > { %983 = vmatprep.subr.bf16.mxu0 %v982_v19 }
  0x46   : > { %985 = vmatpush3.bf16.msra.mxu0 %v982_v19 }
  0x49   : > { %960 = vmatmul.mubr.msk.f32.vlgmr.msra.gmra.mrb[2].mxu0 %vm345_vm0, %v340_v18 }
 0x114   : > { %v939_v20 = vpop.f32.mrb[0].mxu0  ;;  %v950_v22 = vpop.f32.mrb[0].mxu1 }
 0x115   : > { %429 = vst.msk [vmem:[%s1332_s12 + $0x8] sm:$0xff] %vm427_vm1, %v939_v20  ;;  %443 = vrot.lane.b32.xlu1 %v939_v20, %s1149_s13  ;;  %434 = vrot.lane.b32.xlu0 %v939_v20, %s1150_s7  ;;  %v418_v21 = vpop.f32.mrb[1].mxu0  ;;  %539 = vst.msk [vmem:[%s327_s23 + $0x8] sm:$0xff] %vm427_vm1, %v950_v22  ;;  %v529_v23 = vpop.f32.mrb[1].mxu1 }
 0x116   : > { %428 = vst.msk [vmem:[%s1332_s12] sm:$0xff] %vm427_vm1, %v418_v21  ;;  %538 = vst.msk [vmem:[%s327_s23] sm:$0xff] %vm427_vm1, %v529_v23 }
 0x119   : > { %441 = vrot.lane.b32.xlu1 %v418_v21, %s1149_s13  ;;  %432 = vrot.lane.b32.xlu0 %v418_v21, %s1150_s7 }
 0x11c   : > { %v961_v24 = vpop.f32.mrb[2].mxu0  ;;  %v694_v33 = vld [vmem:[%s1332_s12 + $0x8] sm:$0xff] (%p1410_p8) }
 0x11d   : > { %452 = vrot.lane.b32.xlu1 %v939_v20, %s1151_s19  ;;  %450 = vrot.lane.b32.xlu0 %v418_v21, %s1151_s19  ;;  %620 = vst.msk [vmem:[%s337_s18 + $0x8] sm:$0xff] %vm427_vm1, %v961_v24  ;;  %v610_v25 = vpop.f32.mrb[3].mxu0  ;;  %v692_v32 = vld [vmem:[%s1332_s12] sm:$0xff] (%p1410_p8) }
 0x11e   : > { %619 = vst.msk [vmem:[%s337_s18] sm:$0xff] %vm427_vm1, %v610_v25  ;;  %693 = vst [vmem:[%s650_s8] sm:$0xff] (%p1410_p8), %v692_v32 }
 0x11f   : > { %695 = vst [vmem:[%s650_s8 + $0x8] sm:$0xff] (%p1410_p8), %v694_v33 }
 0x187   : > { %v444_v26 = vpop.permute.xlu1 %443  ;;  %v435_v27 = vpop.permute.xlu0 %434 }
 0x188   : > { %898 = vst.msk [vmem:[%s1332_s12 + $0x28] sm:$0xff] %vm427_vm1, %v444_v26  ;;  %896 = vst.msk [vmem:[%s1332_s12 + $0x18] sm:$0xff] %vm427_vm1, %v435_v27 }
 0x18a   : > { %645 = sbr.rel (!%p1410_p8) target bundleno = 409 (0x199), region = 44 }
 0x18b   : > { %v442_v28 = vpop.permute.xlu1 %441  ;;  %v433_v29 = vpop.permute.xlu0 %432 }
 0x18c   : > { %897 = vst.msk [vmem:[%s1332_s12 + $0x20] sm:$0xff] %vm427_vm1, %v442_v28  ;;  %895 = vst.msk [vmem:[%s1332_s12 + $0x10] sm:$0xff] %vm427_vm1, %v433_v29 }
 0x18f   : > { %v453_v30 = vpop.permute.xlu1 %452  ;;  %v451_v31 = vpop.permute.xlu0 %450  ;;  %v698_v35 = vld [vmem:[%s1332_s12 + $0x18] sm:$0xff] (%p1410_p8)  ;;  %v702_v37 = vld [vmem:[%s1332_s12 + $0x28] sm:$0xff] (%p1410_p8) }
 0x190   : > { %900 = vst.msk [vmem:[%s1332_s12 + $0x38] sm:$0xff] %vm427_vm1, %v453_v30  ;;  %899 = vst.msk [vmem:[%s1332_s12 + $0x30] sm:$0xff] %vm427_vm1, %v451_v31 }
 0x191   : > { %699 = vst [vmem:[%s650_s8 + $0x28] sm:$0xff] %v698_v35  ;;  %703 = vst [vmem:[%s650_s8 + $0x48] sm:$0xff] %v702_v37 }
 0x193   : > { %v696_v34 = vld [vmem:[%s1332_s12 + $0x10] sm:$0xff]  ;;  %v700_v36 = vld [vmem:[%s1332_s12 + $0x20] sm:$0xff] }
 0x194   : > { %697 = vst [vmem:[%s650_s8 + $0x20] sm:$0xff] %v696_v34  ;;  %701 = vst [vmem:[%s650_s8 + $0x40] sm:$0xff] %v700_v36 }
 0x197   : > { %v704_v38 = vld [vmem:[%s1332_s12 + $0x30] sm:$0xff]  ;;  %v706_v39 = vld [vmem:[%s1332_s12 + $0x38] sm:$0xff] }
 0x198   : > { %705 = vst [vmem:[%s650_s8 + $0x60] sm:$0xff] %v704_v38  ;;  %707 = vst [vmem:[%s650_s8 + $0x68] sm:$0xff] %v706_v39 }
 0x199 PF: > { %s18_s27 = sadd.s32 1, %s1144_s27   ;;  %s1411_s21 = smov %s1124_s22 }
 0x19a   : > { %p15_p11 = scmp.ge.s32.totalorder %s18_s27, 6   ;;  %s1412_s22 = smov %s1260_s17 }
 0x19b   : > { %s1413_s23 = smov %s1136_s25  ;;  %s1414_s24 = smov %s1140_s26 }
 0x19c   : > { %s1415_s25 = smov %s1418_s29  ;;  %s1416_s26 = smov %s1422_s30 }
 0x19d   :  { %17 = sbr.rel (!%p15_p11) target bundleno = 4 (0x4), region = 136 }
 0x1a4   :  { %755 = vsyncpa [#allocation3], 1 }
 0x1a5   :  { %757 = vsyncpa [#allocation3 + $0x1], 1 }

</bundles_post_ra>
